<compile_context>
chip_gen: v5e
topology: v5e:2x2
jax: 0.10.0
libtpu: 0.0.40
codegen_flags: <defaults>
</compile_context>

<pallas_src>
import jax
import jax.numpy as jnp
from jax.experimental import pallas as pl
from jax.experimental.pallas import tpu as pltpu

LANES = 128                               # all feature widths padded to this lane count
TM_PREF = 256                             # preferred node-row tile
TK_PREF = 512                             # preferred neighbor / reduction tile
RESIDENT_X_BUDGET = 16 * 1024 * 1024      # keep x VMEM-resident if it fits this many bytes
VMEM_LIMIT_BYTES = 48 * 1024 * 1024       # explicit scoped-VMEM ceiling (safe on v5e/v6e/v7x)


def _round_up(x, m):
    return ((x + m - 1) // m) * m


def _pick_tile(n_pad, pref):
    """Largest multiple of 128 <= pref that divides n_pad (n_pad is a multiple of 128)."""
    t = min(pref, n_pad)
    t -= t % 128
    while n_pad % t:
        t -= 128
    return t


def _pad2(a, rows, cols):
    return jnp.zeros((rows, cols), a.dtype).at[:a.shape[0], :a.shape[1]].set(a)


# ----------------------------- kernels -----------------------------

def encoder_kernel(x_ref, w_ref, b_ref, o_ref):
    # Fused post/style encoders: [x_content | x_style] @ blockdiag(Wp^T, Ws^T) + [bp | bs]
    # (output width already padded to 128 lanes, so the structural zeros are free on the MXU).
    o_ref[...] = (
        jnp.dot(x_ref[...], w_ref[...], preferred_element_type=jnp.float32)
        + b_ref[...]
    ).astype(o_ref.dtype)


def _sage_epilogue(acc, inv_deg, wl, self_term, wo, bo, out_dtype):
    """ReLU( (acc * 1/deg) @ Wl + (x_i @ Wr + b) ), optionally followed by the output Linear."""
    agg = (acc * inv_deg).astype(jnp.bfloat16)          # mean in f32, cast for the MXU
    h = jnp.dot(agg, wl, preferred_element_type=jnp.float32) + self_term
    h = jnp.maximum(h, 0.0)
    # TODO(synk): F.dropout(p=0.5) layers are identity (eval mode, training=False).
    if wo is None:
        return h.astype(out_dtype)
    h = h.astype(jnp.bfloat16)
    return (jnp.dot(h, wo, preferred_element_type=jnp.float32) + bo).astype(out_dtype)


def _make_resident_sage_kernel(tm, tk, fuse_out):
    """SAGE layer with the full activation matrix VMEM-resident (x_ref = whole array)."""
    def kernel(adj_ref, x_ref, invdeg_ref, wl_ref, bl_ref, wr_ref, *rest):
        if fuse_out:
            wo_ref, bo_ref, o_ref, acc_ref, self_ref = rest
        else:
            o_ref, acc_ref, self_ref = rest
            wo_ref = bo_ref = None
        i = pl.program_id(0)
        k = pl.program_id(1)

        @pl.when(k == 0)
        def _():
            acc_ref[...] = jnp.zeros_like(acc_ref)
            # k-invariant self term hoisted to k==0 so it overlaps the adjacency stream.
            xi = x_ref[pl.ds(pl.multiple_of(i * tm, tm), tm), :]
            self_ref[...] = (jnp.dot(xi, wr_ref[...], preferred_element_type=jnp.float32)
                             + bl_ref[...])

        # int8 edge counts (exact) -> bf16 for the MXU; f32 accumulation.
        xk = x_ref[pl.ds(pl.multiple_of(k * tk, tk), tk), :]
        acc_ref[...] += jnp.dot(adj_ref[...].astype(jnp.bfloat16), xk,
                                preferred_element_type=jnp.float32)

        @pl.when(k == pl.num_programs(1) - 1)
        def _():
            o_ref[...] = _sage_epilogue(
                acc_ref[...], invdeg_ref[...], wl_ref[...], self_ref[...],
                None if wo_ref is None else wo_ref[...],
                None if bo_ref is None else bo_ref[...],
                o_ref.dtype)
    return kernel


def _make_streamed_sage_kernel(fuse_out):
    """Fallback for very large graphs: neighbor activations streamed per (i, k) tile."""
    def kernel(adj_ref, xk_ref, xi_ref, invdeg_ref, wl_ref, bl_ref, wr_ref, *rest):
        if fuse_out:
            wo_ref, bo_ref, o_ref, acc_ref, self_ref = rest
        else:
            o_ref, acc_ref, self_ref = rest
            wo_ref = bo_ref = None
        k = pl.program_id(1)

        @pl.when(k == 0)
        def _():
            acc_ref[...] = jnp.zeros_like(acc_ref)
            self_ref[...] = (jnp.dot(xi_ref[...], wr_ref[...],
                                     preferred_element_type=jnp.float32)
                             + bl_ref[...])

        acc_ref[...] += jnp.dot(adj_ref[...].astype(jnp.bfloat16), xk_ref[...],
                                preferred_element_type=jnp.float32)

        @pl.when(k == pl.num_programs(1) - 1)
        def _():
            o_ref[...] = _sage_epilogue(
                acc_ref[...], invdeg_ref[...], wl_ref[...], self_ref[...],
                None if wo_ref is None else wo_ref[...],
                None if bo_ref is None else bo_ref[...],
                o_ref.dtype)
    return kernel


# --------------------------- pallas wrappers ---------------------------

def _encode(x_in, w_enc, b_enc):
    n_pad, c_in = x_in.shape
    f_out = w_enc.shape[1]
    tm = _pick_tile(n_pad, TK_PREF)          # encoder is cheap; use big row tiles
    return pl.pallas_call(
        encoder_kernel,
        out_shape=jax.ShapeDtypeStruct((n_pad, f_out), jnp.bfloat16),
        grid=(n_pad // tm,),
        in_specs=[
            pl.BlockSpec((tm, c_in), lambda i: (i, 0)),
            pl.BlockSpec((c_in, f_out), lambda i: (0, 0)),
            pl.BlockSpec((1, f_out), lambda i: (0, 0)),
        ],
        out_specs=pl.BlockSpec((tm, f_out), lambda i: (i, 0)),
        compiler_params=pltpu.CompilerParams(
            dimension_semantics=("parallel",),
            vmem_limit_bytes=VMEM_LIMIT_BYTES),
    )(x_in, w_enc, b_enc)


def _sage_layer(adj, x, inv_deg, wl, bl, wr, wo=None, bo=None):
    n_pad, f_in = x.shape
    h = wl.shape[1]
    fuse_out = wo is not None
    out_dim = wo.shape[1] if fuse_out else h
    out_dtype = jnp.float32 if fuse_out else jnp.bfloat16

    tm = _pick_tile(n_pad, TM_PREF)
    tk = _pick_tile(n_pad, TK_PREF)
    grid = (n_pad // tm, n_pad // tk)

    adj_spec = pl.BlockSpec((tm, tk), lambda i, k: (i, k))
    invdeg_spec = pl.BlockSpec((tm, 1), lambda i, k: (i, 0))
    wl_spec = pl.BlockSpec((f_in, h), lambda i, k: (0, 0))
    bl_spec = pl.BlockSpec((1, h), lambda i, k: (0, 0))
    wr_spec = pl.BlockSpec((f_in, h), lambda i, k: (0, 0))

    resident = (n_pad * f_in * x.dtype.itemsize) <= RESIDENT_X_BUDGET
    if resident:
        # whole activation matrix resident in VMEM: x read from HBM once per layer
        x_spec = pl.BlockSpec((n_pad, f_in), lambda i, k: (0, 0))
        kernel = _make_resident_sage_kernel(tm, tk, fuse_out)
        in_specs = [adj_spec, x_spec, invdeg_spec, wl_spec, bl_spec, wr_spec]
        inputs = (adj, x, inv_deg, wl, bl, wr)
    else:
        xk_spec = pl.BlockSpec((tk, f_in), lambda i, k: (k, 0))
        xi_spec = pl.BlockSpec((tm, f_in), lambda i, k: (i, 0))
        kernel = _make_streamed_sage_kernel(fuse_out)
        in_specs = [adj_spec, xk_spec, xi_spec, invdeg_spec, wl_spec, bl_spec, wr_spec]
        inputs = (adj, x, x, inv_deg, wl, bl, wr)

    if fuse_out:
        in_specs += [pl.BlockSpec((h, out_dim), lambda i, k: (0, 0)),
                     pl.BlockSpec((1, out_dim), lambda i, k: (0, 0))]
        inputs = inputs + (wo, bo)

    return pl.pallas_call(
        kernel,
        out_shape=jax.ShapeDtypeStruct((n_pad, out_dim), out_dtype),
        grid=grid,
        in_specs=in_specs,
        out_specs=pl.BlockSpec((tm, out_dim), lambda i, k: (i, 0)),
        scratch_shapes=[pltpu.VMEM((tm, f_in), jnp.float32),   # mean-agg accumulator
                        pltpu.VMEM((tm, h), jnp.float32)],     # hoisted self term
        compiler_params=pltpu.CompilerParams(
            dimension_semantics=("parallel", "arbitrary"),
            vmem_limit_bytes=VMEM_LIMIT_BYTES),
    )(*inputs)


# ------------------------- host-side preprocessing -------------------------

def _prep_weights(params, num_classes):
    (post_w, post_b, style_w, style_b,
     c1_wl, c1_b, c1_wr,
     c2_wl, c2_b, c2_wr,
     c3_wl, c3_b, c3_wr,
     out_w, out_b) = params
    bf16 = jnp.bfloat16
    f = post_w.shape[0]                        # num_feature_concat
    c_dim = post_w.shape[1]
    s_dim = style_w.shape[1]
    f0 = 2 * f
    h1 = c1_wl.shape[0]
    h2 = c2_wl.shape[0]

    f0p = _round_up(f0, LANES)
    h1p = _round_up(h1, LANES)
    h2p = _round_up(h2, LANES)
    assert num_classes <= LANES, "num_classes must be <= 128 (lane-dense output slab)"

    # Fused block-diagonal encoder weight [C+S, f0p] and bias [1, f0p] (padded cols stay 0).
    w_enc = jnp.zeros((c_dim + s_dim, f0p), jnp.float32)
    w_enc = w_enc.at[:c_dim, :f].set(post_w.T)
    w_enc = w_enc.at[c_dim:, f:f0].set(style_w.T)
    b_enc = jnp.zeros((1, f0p), jnp.float32)
    b_enc = b_enc.at[:, :f].set(post_b).at[:, f:f0].set(style_b)

    # Pre-transposed [in, out], lane-padded, bf16 SAGE weights (biases stay f32).
    wl1 = _pad2(c1_wl.T, f0p, h1p).astype(bf16)
    wr1 = _pad2(c1_wr.T, f0p, h1p).astype(bf16)
    b1 = _pad2(c1_b, 1, h1p)
    wl2 = _pad2(c2_wl.T, h1p, h2p).astype(bf16)
    wr2 = _pad2(c2_wr.T, h1p, h2p).astype(bf16)
    b2 = _pad2(c2_b, 1, h2p)
    wl3 = _pad2(c3_wl.T, h2p, h2p).astype(bf16)
    wr3 = _pad2(c3_wr.T, h2p, h2p).astype(bf16)
    b3 = _pad2(c3_b, 1, h2p)

    # Output Linear padded to a lane-dense 128-wide slab (sliced in the wrapper).
    w_out = _pad2(out_w.T, h2p, LANES).astype(bf16)
    b_out = _pad2(out_b, 1, LANES)

    return (w_enc.astype(bf16), b_enc,
            wl1, b1, wr1,
            wl2, b2, wr2,
            wl3, b3, wr3,
            w_out, b_out)


def _build_graph(edge_index, n_pad):
    """int8 edge-count adjacency + f32 inverse in-degree.

    NOTE: int8 storage caps per-(dst, src) edge multiplicity at 127; exact otherwise.
    """
    src, dst = edge_index[0], edge_index[1]
    counts = jnp.zeros((n_pad, n_pad), jnp.int32).at[dst, src].add(1)
    deg = counts.sum(axis=1, keepdims=True).astype(jnp.float32)
    inv_deg = 1.0 / jnp.maximum(deg, 1.0)          # degree-0 nodes aggregate 0
    return counts.astype(jnp.int8), inv_deg


def fake_news_forward(x_content, x_style, edge_index, params, num_classes):
    n = x_content.shape[0]
    n_pad = _round_up(max(n, 128), 128)

    (w_enc, b_enc,
     wl1, b1, wr1,
     wl2, b2, wr2,
     wl3, b3, wr3,
     w_out, b_out) = _prep_weights(params, num_classes)

    adj, inv_deg = _build_graph(edge_index, n_pad)

    x_in = jnp.concatenate([x_content, x_style], axis=1)
    x_in = jnp.pad(x_in, ((0, n_pad - n), (0, 0))).astype(jnp.bfloat16)

    x0 = _encode(x_in, w_enc, b_enc)                            # [n_pad, pad(2F)]  bf16
    x1 = _sage_layer(adj, x0, inv_deg, wl1, b1, wr1)            # [n_pad, pad(H1)]  bf16
    x2 = _sage_layer(adj, x1, inv_deg, wl2, b2, wr2)            # [n_pad, pad(H2)]  bf16
    logits = _sage_layer(adj, x2, inv_deg, wl3, b3, wr3,
                         w_out, b_out)                          # [n_pad, 128]      f32
    return logits[:n, :num_classes]


# ------------------------- parameters / reference -------------------------

def _linear_params(key, out_f, in_f, bias=True):
    kw, kb = jax.random.split(key)
    w = jax.random.normal(kw, (out_f, in_f), jnp.float32) * 0.1
    if bias:
        b = jax.random.normal(kb, (1, out_f), jnp.float32) * 0.1
        return w, b
    return (w,)


def build_params(key, hidden_channels_1, hidden_channels_2, num_feature_concat,
                 num_content_feature, num_style_feature, num_classes):
    keys = jax.random.split(key, 9)
    post_w, post_b = _linear_params(keys[0], num_feature_concat, num_content_feature)
    style_w, style_b = _linear_params(keys[1], num_feature_concat, num_style_feature)
    c1_wl, c1_b = _linear_params(keys[2], hidden_channels_1, 2 * num_feature_concat)
    (c1_wr,) = _linear_params(keys[3], hidden_channels_1, 2 * num_feature_concat, bias=False)
    c2_wl, c2_b = _linear_params(keys[4], hidden_channels_2, hidden_channels_1)
    (c2_wr,) = _linear_params(keys[5], hidden_channels_2, hidden_channels_1, bias=False)
    c3_wl, c3_b = _linear_params(keys[6], hidden_channels_2, hidden_channels_2)
    (c3_wr,) = _linear_params(keys[7], hidden_channels_2, hidden_channels_2, bias=False)
    out_w, out_b = _linear_params(keys[8], num_classes, hidden_channels_2)
    return (post_w, post_b, style_w, style_b,
            c1_wl, c1_b, c1_wr,
            c2_wl, c2_b, c2_wr,
            c3_wl, c3_b, c3_wr,
            out_w, out_b)


def reference_forward(x_content, x_style, edge_index, params):
    """Pure-JAX f32 reference matching the PyTorch module (eval mode)."""
    (post_w, post_b, style_w, style_b,
     c1_wl, c1_b, c1_wr, c2_wl, c2_b, c2_wr, c3_wl, c3_b, c3_wr,
     out_w, out_b) = params
    n = x_content.shape[0]
    src, dst = edge_index[0], edge_index[1]
    adj = jnp.zeros((n, n), jnp.float32).at[dst, src].add(1.0)
    a_mean = adj / jnp.maximum(adj.sum(axis=1, keepdims=True), 1.0)
    xc = x_content @ post_w.T + post_b
    xs = x_style @ style_w.T + style_b
    x = jnp.concatenate([xc, xs], axis=1)

    def sage(x, wl, b, wr):
        return (a_mean @ x) @ wl.T + b + x @ wr.T

    x = jax.nn.relu(sage(x, c1_wl, c1_b, c1_wr))
    x = jax.nn.relu(sage(x, c2_wl, c2_b, c2_wr))
    x = jax.nn.relu(sage(x, c3_wl, c3_b, c3_wr))
    return x @ out_w.T + out_b


if __name__ == "__main__":
    # small deterministic example
    N = 16
    num_content_feature = 32
    num_style_feature = 16
    num_feature_concat = 16      # -> SAGE input = 32
    hidden_channels_1 = 32
    hidden_channels_2 = 16
    num_classes = 4

    key = jax.random.PRNGKey(0)
    k_xc, k_xs, k_params = jax.random.split(key, 3)

    x_content = jax.random.normal(k_xc, (N, num_content_feature), jnp.float32)
    x_style = jax.random.normal(k_xs, (N, num_style_feature), jnp.float32)

    # simple bidirectional ring graph
    idx = jnp.arange(N)
    src = jnp.concatenate([idx, (idx + 1) % N])
    dst = jnp.concatenate([(idx + 1) % N, idx])
    edge_index = jnp.stack([src, dst])                         # [2, E]
    edge_type = jnp.zeros((edge_index.shape[1],), jnp.int32)   # unused by forward

    params = build_params(k_params, hidden_channels_1, hidden_channels_2,
                          num_feature_concat, num_content_feature,
                          num_style_feature, num_classes)

    out = fake_news_forward(x_content, x_style, edge_index, params, num_classes)
    jax.block_until_ready(out)
    assert out.shape == (N, num_classes)

    ref = reference_forward(x_content, x_style, edge_index, params)
    err = float(jnp.max(jnp.abs(out - ref)))
    assert err < 0.1, f"max abs error vs f32 reference: {err}"

    print("KERNEL_OK")
</pallas_src>

<mosaic_0001>
module attributes {stable_mosaic.version = 11 : i64} {
  func.func @encoder_kernel(%arg0: i32, %arg1: memref<128x48xbf16, #tpu.memory_space<vmem>>, %arg2: memref<48x128xbf16, #tpu.memory_space<vmem>>, %arg3: memref<1x128xf32, #tpu.memory_space<vmem>>, %arg4: memref<128x128xbf16, #tpu.memory_space<vmem>>) attributes {dimension_semantics = [#tpu.dimension_semantics<parallel>], iteration_bounds = array<i64: 1>, scalar_prefetch = 0 : i64, scratch_operands = 0 : i64, tpu.core_type = #tpu.core_type<tc>, window_params = [{transform_indices = @transform_0, window_bounds = array<i64: 128, 48>}, {pipeline_mode = #tpu.pipeline_mode<synchronous>, transform_indices = @transform_1, window_bounds = array<i64: 48, 128>}, {pipeline_mode = #tpu.pipeline_mode<synchronous>, transform_indices = @transform_2, window_bounds = array<i64: 1, 128>}, {transform_indices = @transform_3, window_bounds = array<i64: 128, 128>}]} {
    %c0 = arith.constant 0 : index
    %c0_0 = arith.constant 0 : index
    %0 = vector.load %arg1[%c0, %c0_0] : memref<128x48xbf16, #tpu.memory_space<vmem>>, vector<128x48xbf16>
    %c0_1 = arith.constant 0 : index
    %c0_2 = arith.constant 0 : index
    %1 = vector.load %arg2[%c0_1, %c0_2] : memref<48x128xbf16, #tpu.memory_space<vmem>>, vector<48x128xbf16>
    %cst = arith.constant dense<0.000000e+00> : vector<128x128xf32>
    %2 = tpu.matmul %0, %1, %cst {dimension_numbers = #tpu.dot_dimension_numbers<[1], [0], [0], [1], [0, 0, 1, 1], [], []>} : vector<128x48xbf16>, vector<48x128xbf16>, vector<128x128xf32> -> vector<128x128xf32>
    %c0_3 = arith.constant 0 : index
    %c0_4 = arith.constant 0 : index
    %3 = vector.load %arg3[%c0_3, %c0_4] : memref<1x128xf32, #tpu.memory_space<vmem>>, vector<1x128xf32>
    %4 = vector.broadcast %3 : vector<1x128xf32> to vector<128x128xf32>
    %5 = arith.addf %2, %4 : vector<128x128xf32>
    %6 = arith.truncf %5 : vector<128x128xf32> to vector<128x128xbf16>
    %c0_5 = arith.constant 0 : index
    %c0_6 = arith.constant 0 : index
    %7 = vector.load %arg4[%c0_5, %c0_6] : memref<128x128xbf16, #tpu.memory_space<vmem>>, vector<128x128xbf16>
    tpu.vector_store %arg4[%c0_5, %c0_6], %6 {strides = array<i32>} : memref<128x128xbf16, #tpu.memory_space<vmem>>, vector<128x128xbf16>,
    return
  }
  func.func @transform_0(%arg0: i32) -> (i32, i32) {
    %c0_i32 = arith.constant 0 : i32
    %c0_i32_0 = arith.constant 0 : i32
    return %arg0, %c0_i32 : i32, i32
  }
  func.func @transform_1(%arg0: i32) -> (i32, i32) {
    %c0_i32 = arith.constant 0 : i32
    %c0_i32_0 = arith.constant 0 : i32
    %c0_i32_1 = arith.constant 0 : i32
    return %c0_i32, %c0_i32_0 : i32, i32
  }
  func.func @transform_2(%arg0: i32) -> (i32, i32) {
    %c0_i32 = arith.constant 0 : i32
    %c0_i32_0 = arith.constant 0 : i32
    %c0_i32_1 = arith.constant 0 : i32
    return %c0_i32, %c0_i32_0 : i32, i32
  }
  func.func @transform_3(%arg0: i32) -> (i32, i32) {
    %c0_i32 = arith.constant 0 : i32
    %c0_i32_0 = arith.constant 0 : i32
    return %arg0, %c0_i32 : i32, i32
  }
}

</mosaic_0001>

<bundles_post_ra>
// kernel: tpu_custom_call.1
= control target key start
LH: loop header
LB: loop body
LE: loop exit
PB: predicated region body
PF: predicated region fallthrough
CT: control target
= control target key end

     0   :  { %s443_s0 = inlined_call_operand.vmem [shape: bf16[128,48], index: 0, kind: input, shape index: {}]   ;;  %s444_s1 = inlined_call_operand.vmem [shape: bf16[48,128], index: 1, kind: input, shape index: {}]   ;;  %s445_s2 = inlined_call_operand.vmem [shape: f32[1,128], index: 2, kind: input, shape index: {}]   ;;  %s446_s3 = inlined_call_operand.hbm [shape: bf16[128,128], index: 3, kind: output, shape index: {}]  }
   0x1   :  { %v286_v0 = vld [vmem:[%s444_s1 + $0x10] sm:$0xff]  ;;  %v285_v1 = vld [vmem:[%s444_s1 + $0x8] sm:$0xff] }
   0x2   :  { %130 = vmatpush.bf16.msra.mxu0 %v286_v0  ;;  %334 = vmatpush.bf16.msra.mxu1 %v286_v0 }
   0x3   :  { %335 = vmatpush.bf16.msra.mxu2 %v286_v0  ;;  %336 = vmatpush.bf16.msra.mxu3 %v286_v0 }
   0x4   :  { %8 = vsyncpa [#allocation3], 0  ;;  %v284_v2 = vld [vmem:[%s444_s1] sm:$0xff]  ;;  %v278_v4 = vld [vmem:[%s443_s0 + $0x10] sm:$0xff]  ;;  %vm100_vm0 = vcmask 392192   ;;  %s212_s10 = sshll.u32 %s446_s3, 4  ;;  %s213_s10 = int_to_ptr.hbm [resolvable:$true] %s212_s10 }
   0x5   :  { %v276_v3 = vld [vmem:[%s443_s0] sm:$0xff]  ;;  %v282_v6 = vld [vmem:[%s443_s0 + $0x30] sm:$0xff]  ;;  %v277_v7 = vld [vmem:[%s443_s0 + $0x8] sm:$0xff]  ;;  %s374_s11 = smov 64   ;;  %s375_s12 = smov 4  }
   0x6   :  { %131 = vmatpush.bf16.msra.mxu0 %v285_v1  ;;  %337 = vmatpush.bf16.msra.mxu1 %v285_v1  ;;  %v280_v5 = vld [vmem:[%s443_s0 + $0x20] sm:$0xff]  ;;  %v279_v8 = vld [vmem:[%s443_s0 + $0x18] sm:$0xff]  ;;  %v281_v9 = vld [vmem:[%s443_s0 + $0x28] sm:$0xff] }
   0x7   :  { %338 = vmatpush.bf16.msra.mxu2 %v285_v1  ;;  %339 = vmatpush.bf16.msra.mxu3 %v285_v1  ;;  %v283_v10 = vld [vmem:[%s443_s0 + $0x38] sm:$0xff]  ;;  %v346_v13 = vld [vmem:[%s445_s2] ss:$0 sm:$0xff]  ;;  %s373_s0 = smov [#allocation2]  }
   0x8   :  { %s210_s2 = sshll.u32 %s373_s0, 4  ;;  %s211_s2 = int_to_ptr.vmem [resolvable:$true] %s210_s2 }
   0xa   :  { %132 = vmatpush.bf16.msra.mxu0 %v284_v2  ;;  %340 = vmatpush.bf16.msra.mxu1 %v284_v2 }
   0xb   :  { %341 = vmatpush.bf16.msra.mxu2 %v284_v2  ;;  %342 = vmatpush.bf16.msra.mxu3 %v284_v2 }
   0xd   :  { %268 = vmatmul.msk.bf16.vlgmr.msra.gmra.mxu0 %vm100_vm0, %v276_v3  ;;  %270 = vmatmul.msk.bf16.vlgmr.msra.gmra.mxu1 %vm100_vm0, %v278_v4 }
   0xe   :  { %272 = vmatmul.msk.bf16.vlgmr.msra.gmra.mxu2 %vm100_vm0, %v280_v5  ;;  %274 = vmatmul.msk.bf16.vlgmr.msra.gmra.mxu3 %vm100_vm0, %v282_v6 }
  0x1d   :  { %269 = vmatmul.msk.bf16.gmra.mxu0 %vm100_vm0, %v277_v7  ;;  %271 = vmatmul.msk.bf16.gmra.mxu1 %vm100_vm0, %v279_v8 }
  0x1e   :  { %273 = vmatmul.msk.bf16.gmra.mxu2 %vm100_vm0, %v281_v9  ;;  %275 = vmatmul.msk.bf16.gmra.mxu3 %vm100_vm0, %v283_v10 }
  0x8a   :  { %v134_v11 = vpop.f32.mrf.mxu0  ;;  %v144_v12 = vpop.f32.mrf.mxu1 }
  0x8b   :  { %v135_v18 = vadd.f32 %v346_v13, %v134_v11  ;;  %v145_v19 = vadd.f32 %v346_v13, %v144_v12 }
  0x91   :  { %v154_v14 = vpop.f32.mrf.mxu2  ;;  %v164_v15 = vpop.f32.mrf.mxu3 }
  0x92   :  { %v136_v16 = vpop.f32.mrf.mxu0  ;;  %v146_v17 = vpop.f32.mrf.mxu1  ;;  %v155_v26 = vadd.f32 %v346_v13, %v154_v14  ;;  %v165_v27 = vadd.f32 %v346_v13, %v164_v15 }
  0x93   :  { %v137_v20 = vadd.f32 %v346_v13, %v136_v16  ;;  %v147_v21 = vadd.f32 %v346_v13, %v146_v17 }
  0x95   :  { %v290_v22 = vpack.c.bf16 %v137_v20, %v135_v18  ;;  %v300_v23 = vpack.c.bf16 %v147_v21, %v145_v19 }
  0x97   :  { %291 = vst [vmem:[#allocation2] sm:$0xff] %v290_v22  }
  0x98   :  { %328 = vst [vmem:[#allocation2 + $0x10] sm:$0xff] %v300_v23  }
  0x99   :  { %v156_v24 = vpop.f32.mrf.mxu2  ;;  %v166_v25 = vpop.f32.mrf.mxu3 }
  0x9a   :  { %v157_v28 = vadd.f32 %v346_v13, %v156_v24  ;;  %v167_v29 = vadd.f32 %v346_v13, %v166_v25  ;;  %v139_v30 = vpop.f32.mrf.mxu0  ;;  %v149_v31 = vpop.f32.mrf.mxu1 }
  0x9b   :  { %v140_v38 = vadd.f32 %v346_v13, %v139_v30  ;;  %v150_v39 = vadd.f32 %v346_v13, %v149_v31 }
  0x9c   :  { %v310_v32 = vpack.c.bf16 %v157_v28, %v155_v26  ;;  %v320_v33 = vpack.c.bf16 %v167_v29, %v165_v27 }
  0x9e   :  { %330 = vst [vmem:[#allocation2 + $0x20] sm:$0xff] %v310_v32  }
  0x9f   :  { %332 = vst [vmem:[#allocation2 + $0x30] sm:$0xff] %v320_v33  }
  0xa1   :  { %v159_v34 = vpop.f32.mrf.mxu2  ;;  %v169_v35 = vpop.f32.mrf.mxu3 }
  0xa2   :  { %v141_v36 = vpop.f32.mrf.mxu0  ;;  %v151_v37 = vpop.f32.mrf.mxu1  ;;  %v160_v46 = vadd.f32 %v346_v13, %v159_v34  ;;  %v170_v47 = vadd.f32 %v346_v13, %v169_v35 }
  0xa3   :  { %v142_v40 = vadd.f32 %v346_v13, %v141_v36  ;;  %v152_v41 = vadd.f32 %v346_v13, %v151_v37 }
  0xa5   :  { %v295_v42 = vpack.c.bf16 %v142_v40, %v140_v38  ;;  %v305_v43 = vpack.c.bf16 %v152_v41, %v150_v39 }
  0xa7   :  { %327 = vst [vmem:[#allocation2 + $0x8] sm:$0xff] %v295_v42  }
  0xa8   :  { %329 = vst [vmem:[#allocation2 + $0x18] sm:$0xff] %v305_v43  }
  0xa9   :  { %v161_v44 = vpop.f32.mrf.mxu2  ;;  %v171_v45 = vpop.f32.mrf.mxu3 }
  0xaa   :  { %v162_v48 = vadd.f32 %v346_v13, %v161_v44  ;;  %v172_v49 = vadd.f32 %v346_v13, %v171_v45 }
  0xac   :  { %v315_v50 = vpack.c.bf16 %v162_v48, %v160_v46  ;;  %v325_v51 = vpack.c.bf16 %v172_v49, %v170_v47 }
  0xae   :  { %331 = vst [vmem:[#allocation2 + $0x28] sm:$0xff] %v315_v50  }
  0xaf   :  { %333 = vst [vmem:[#allocation2 + $0x38] sm:$0xff] %v325_v51  }
  0xb0   :  { %218 = dma.vmem_to_hbm [thread:$0]  %s211_s2, 1024, %s213_s10, [#allocation3], %s374_s11, %s374_s11, %s375_s12  }
  0xb1   :  { %371 = dma.done.wait [#allocation3], 1024  }
  0xb2   :  { %372 = vsyncadd [#allocation3], 4294966272 }
  0xb3   :  { %223 = vsyncpa [#allocation3], 1 }

</bundles_post_ra>
